<compile_context>
chip_gen: v5e
topology: v5e:2x2
jax: 0.10.0
libtpu: 0.0.40
codegen_flags: <defaults>
</compile_context>

<pallas_src>
import math
import functools

import jax
import jax.numpy as jnp
from jax.experimental import pallas as pl
from jax.experimental.pallas import tpu as pltpu

LANE = 128  # only the output's last (lane) dim is padded to this


# ----------------------------- Pallas kernel ------------------------------

def gin_fused_kernel(eps_ref, adj_ref, x_ref, *rest, num_gin_layers):
    """Entire GIN forward in one kernel (statically unrolled over layers).

    eps_ref: (L,)   f32 SMEM   per-layer eps
    adj_ref: (N, N) bf16 VMEM  dense adjacency (shared across layers)
    x_ref:   (N, D) bf16 VMEM  node features
    rest:    w1_0, w2_0, ..., w1_{L-1}, w2_{L-1}  (bf16 VMEM, true shapes),
             fcw (Dh, Dp) bf16, fcb (1, Dp) f32, out (N, Dp) f32
    """
    w_refs = rest[: 2 * num_gin_layers]
    fcw_ref, fcb_ref, out_ref = rest[2 * num_gin_layers:]

    adj = adj_ref[...]                      # bf16, stays resident in vregs/VMEM
    h = x_ref[...].astype(jnp.float32)      # activations carried in f32

    for l in range(num_gin_layers):
        # sum aggregation over neighbours (MXU, f32 accumulate) ...
        agg = jnp.dot(adj, h.astype(jnp.bfloat16), preferred_element_type=jnp.float32)
        # ... plus the (1+eps)*self term as a VPU FMA (free filler slot, f32).
        pre = agg + (1.0 + eps_ref[l]) * h
        # MLP: relu(pre @ W1) @ W2 (both bias-free), then outer ReLU.
        h1 = jnp.maximum(
            jnp.dot(pre.astype(jnp.bfloat16), w_refs[2 * l][...],
                    preferred_element_type=jnp.float32), 0.0)
        h2 = jnp.dot(h1.astype(jnp.bfloat16), w_refs[2 * l + 1][...],
                     preferred_element_type=jnp.float32)
        h = jnp.maximum(h2, 0.0)
        # TODO(synk): training-mode dropout would need pltpu.prng_seed/prng_random_bits
        # here; eval mode is identity.

    # Final fc with bias; output last dim padded to 128 -> lane-dense unmasked store.
    out_ref[...] = (
        jnp.dot(h.astype(jnp.bfloat16), fcw_ref[...],
                preferred_element_type=jnp.float32) + fcb_ref[...]
    )


# ------------------------------ wrapper ------------------------------------

def _round_up(x, m):
    return ((x + m - 1) // m) * m


def _pad_to(a, shape):
    pads = [(0, t - s) for s, t in zip(a.shape, shape)]
    return jnp.pad(a, pads)


def prepare_inputs(adj, x, params):
    """One-time prep (casts / padding). Keep this OUT of the per-forward hot path."""
    d_out = params["fc_w"].shape[1]
    d_out_p = _round_up(d_out, LANE)

    eps = jnp.concatenate([e for (_, _, e) in params["gin_layers"]]).astype(jnp.float32)
    adj_bf = adj.astype(jnp.bfloat16)
    x_bf = x.astype(jnp.bfloat16)
    weights = []
    for (w1, w2, _) in params["gin_layers"]:
        weights.append(w1.astype(jnp.bfloat16))
        weights.append(w2.astype(jnp.bfloat16))
    fcw_pad = _pad_to(params["fc_w"], (params["fc_w"].shape[0], d_out_p)).astype(jnp.bfloat16)
    fcb_pad = _pad_to(params["fc_b"], (1, d_out_p)).astype(jnp.float32)
    return eps, adj_bf, x_bf, tuple(weights), fcw_pad, fcb_pad


def _cost_estimate(adj, x, params):
    """FLOPs / bytes from TRUE (unpadded) dims — advisory hint only."""
    n = x.shape[0]
    d = x.shape[1]
    flops = 0
    for (w1, w2, _) in params["gin_layers"]:
        flops += 2 * n * n * d                       # adj @ h
        flops += 2 * n * w1.shape[0] * w1.shape[1]   # pre @ W1
        flops += 2 * n * w2.shape[0] * w2.shape[1]   # h1 @ W2
        d = w2.shape[1]
    flops += 2 * n * params["fc_w"].shape[0] * params["fc_w"].shape[1]
    bytes_accessed = 2 * (adj.size + x.size
                          + sum(w1.size + w2.size for (w1, w2, _) in params["gin_layers"])
                          + params["fc_w"].size) \
        + 4 * (params["fc_b"].size + n * params["fc_w"].shape[1])
    return int(flops), int(bytes_accessed)


def gin_pallas_call(eps, adj, x, weights, fcw, fcb, *,
                    num_gin_layers, d_out, flops, bytes_accessed):
    n = x.shape[0]
    d_p = fcw.shape[1]
    n_vmem_inputs = 2 + len(weights) + 2  # adj, x, weights..., fcw, fcb

    out_pad = pl.pallas_call(
        functools.partial(gin_fused_kernel, num_gin_layers=num_gin_layers),
        out_shape=jax.ShapeDtypeStruct((n, d_p), jnp.float32),
        in_specs=[pl.BlockSpec(memory_space=pltpu.MemorySpace.SMEM)]
                 + [pl.BlockSpec(memory_space=pltpu.MemorySpace.VMEM)] * n_vmem_inputs,
        out_specs=pl.BlockSpec(memory_space=pltpu.MemorySpace.VMEM),
        compiler_params=pltpu.CompilerParams(vmem_limit_bytes=32 * 1024 * 1024),
        cost_estimate=pl.CostEstimate(
            flops=flops, transcendentals=0, bytes_accessed=bytes_accessed),
    )(eps, adj, x, *weights, fcw, fcb)

    # Slice the lane-padded output back to the true width (N was never padded).
    return out_pad[:, :d_out]
    # TODO(synk): for N of a few thousand the dense (N,N) adjacency outgrows VMEM
    # (v7x's 64 MiB first); that regime needs a row-block grid over nodes with
    # dimension_semantics=("parallel", ..., "arbitrary"), 256-wide output tiles on
    # v6e/v7x (128 on v5e) and a VMEM accumulator over the adjacency-column axis.


# --------------------------- parameter init ----------------------------------

def init_params(key, num_layers, input_dim, hidden_dim, output_dim):
    """Deterministic init mimicking nn.Linear.reset_parameters (U(-1/sqrt(fan_in), +))."""
    gin_layers = []
    for layer in range(num_layers - 1):
        din = input_dim if layer == 0 else hidden_dim
        key, k1, k2 = jax.random.split(key, 3)
        bound1 = 1.0 / math.sqrt(din)
        bound2 = 1.0 / math.sqrt(hidden_dim)
        w1 = jax.random.uniform(k1, (din, hidden_dim), jnp.float32, -bound1, bound1)
        w2 = jax.random.uniform(k2, (hidden_dim, hidden_dim), jnp.float32, -bound2, bound2)
        eps = jnp.zeros((1,), jnp.float32)  # learn_eps=True, reset to 0
        gin_layers.append((w1, w2, eps))
    key, kw, kb = jax.random.split(key, 3)
    bound = 1.0 / math.sqrt(hidden_dim)
    fc_w = jax.random.uniform(kw, (hidden_dim, output_dim), jnp.float32, -bound, bound)
    fc_b = jax.random.uniform(kb, (1, output_dim), jnp.float32, -bound, bound)
    return {"gin_layers": gin_layers, "fc_w": fc_w, "fc_b": fc_b}


# ------------------------------ reference ------------------------------------

def ref_forward(adj, x, params):
    """Pure-JAX reference with the same bf16-operand / f32-accumulate casts."""
    adj_bf = adj.astype(jnp.bfloat16)
    h = x.astype(jnp.float32)
    for (w1, w2, eps) in params["gin_layers"]:
        agg = jnp.dot(adj_bf, h.astype(jnp.bfloat16), preferred_element_type=jnp.float32)
        pre = agg + (1.0 + eps[0]) * h
        h1 = jnp.maximum(jnp.dot(pre.astype(jnp.bfloat16), w1.astype(jnp.bfloat16),
                                 preferred_element_type=jnp.float32), 0.0)
        h = jnp.maximum(jnp.dot(h1.astype(jnp.bfloat16), w2.astype(jnp.bfloat16),
                                preferred_element_type=jnp.float32), 0.0)
    return jnp.dot(h.astype(jnp.bfloat16), params["fc_w"].astype(jnp.bfloat16),
                   preferred_element_type=jnp.float32) + params["fc_b"]


# --------------------------------- main ---------------------------------------

if __name__ == "__main__":
    # Small, forward-consistent shapes.
    NUM_LAYERS = 3        # -> 2 GINConv layers
    N_NODES = 64
    INPUT_DIM = 16
    HIDDEN_DIM = 32
    OUTPUT_DIM = 8

    key = jax.random.PRNGKey(0)
    key, k_adj, k_x, k_p = jax.random.split(key, 4)

    # Deterministic random undirected graph (dense adjacency, no self loops).
    upper = (jax.random.uniform(k_adj, (N_NODES, N_NODES)) < 0.1).astype(jnp.float32)
    adj = jnp.triu(upper, 1)
    adj = adj + adj.T

    x = jax.random.normal(k_x, (N_NODES, INPUT_DIM), jnp.float32)

    params = init_params(k_p, NUM_LAYERS, INPUT_DIM, HIDDEN_DIM, OUTPUT_DIM)

    # One-time prep (casts / padding) — out of the per-call hot path.
    eps, adj_bf, x_bf, weights, fcw_pad, fcb_pad = prepare_inputs(adj, x, params)
    flops, bytes_accessed = _cost_estimate(adj, x, params)

    gin_forward = jax.jit(functools.partial(
        gin_pallas_call,
        num_gin_layers=len(params["gin_layers"]),
        d_out=OUTPUT_DIM, flops=flops, bytes_accessed=bytes_accessed))

    out = gin_forward(eps, adj_bf, x_bf, weights, fcw_pad, fcb_pad)
    jax.block_until_ready(out)

    # Sanity: pure-JAX reference of the same (bf16-operand) math.
    ref = ref_forward(adj, x, params)
    assert out.shape == (N_NODES, OUTPUT_DIM)
    assert jnp.allclose(out, ref, atol=2e-2, rtol=2e-2)

    print("KERNEL_OK")
</pallas_src>

<mosaic_0001>
module attributes {stable_mosaic.version = 11 : i64} {
  func.func @gin_fused_kernel(%arg0: memref<2xf32, #tpu.memory_space<smem>>, %arg1: memref<64x64xbf16, #tpu.memory_space<vmem>>, %arg2: memref<64x16xbf16, #tpu.memory_space<vmem>>, %arg3: memref<16x32xbf16, #tpu.memory_space<vmem>>, %arg4: memref<32x32xbf16, #tpu.memory_space<vmem>>, %arg5: memref<32x32xbf16, #tpu.memory_space<vmem>>, %arg6: memref<32x32xbf16, #tpu.memory_space<vmem>>, %arg7: memref<32x128xbf16, #tpu.memory_space<vmem>>, %arg8: memref<1x128xf32, #tpu.memory_space<vmem>>, %arg9: memref<64x128xf32, #tpu.memory_space<vmem>>) attributes {dimension_semantics = [], scalar_prefetch = 0 : i64, scratch_operands = 0 : i64, tpu.core_type = #tpu.core_type<tc>} {
    %c0 = arith.constant 0 : index
    %c0_0 = arith.constant 0 : index
    %0 = vector.load %arg1[%c0, %c0_0] : memref<64x64xbf16, #tpu.memory_space<vmem>>, vector<64x64xbf16>
    %c0_1 = arith.constant 0 : index
    %c0_2 = arith.constant 0 : index
    %1 = vector.load %arg2[%c0_1, %c0_2] : memref<64x16xbf16, #tpu.memory_space<vmem>>, vector<64x16xbf16>
    %2 = arith.extf %1 : vector<64x16xbf16> to vector<64x16xf32>
    %3 = arith.truncf %2 : vector<64x16xf32> to vector<64x16xbf16>
    %cst = arith.constant dense<0.000000e+00> : vector<64x16xf32>
    %4 = tpu.matmul %0, %3, %cst {dimension_numbers = #tpu.dot_dimension_numbers<[1], [0], [0], [1], [0, 0, 1, 1], [], []>} : vector<64x64xbf16>, vector<64x16xbf16>, vector<64x16xf32> -> vector<64x16xf32>
    %c0_3 = arith.constant 0 : index
    %5 = memref.load %arg0[%c0_3] : memref<2xf32, #tpu.memory_space<smem>>
    %cst_4 = arith.constant 1.000000e+00 : f32
    %6 = arith.addf %cst_4, %5 : f32
    %7 = vector.broadcast %6 : f32 to vector<64x16xf32>
    %8 = arith.mulf %7, %2 : vector<64x16xf32>
    %9 = arith.addf %4, %8 : vector<64x16xf32>
    %10 = arith.truncf %9 : vector<64x16xf32> to vector<64x16xbf16>
    %c0_5 = arith.constant 0 : index
    %c0_6 = arith.constant 0 : index
    %11 = vector.load %arg3[%c0_5, %c0_6] : memref<16x32xbf16, #tpu.memory_space<vmem>>, vector<16x32xbf16>
    %cst_7 = arith.constant dense<0.000000e+00> : vector<64x32xf32>
    %12 = tpu.matmul %10, %11, %cst_7 {dimension_numbers = #tpu.dot_dimension_numbers<[1], [0], [0], [1], [0, 0, 1, 1], [], []>} : vector<64x16xbf16>, vector<16x32xbf16>, vector<64x32xf32> -> vector<64x32xf32>
    %cst_8 = arith.constant 0.000000e+00 : f32
    %13 = vector.broadcast %cst_8 : f32 to vector<64x32xf32>
    %14 = arith.maximumf %12, %13 : vector<64x32xf32>
    %15 = arith.truncf %14 : vector<64x32xf32> to vector<64x32xbf16>
    %c0_9 = arith.constant 0 : index
    %c0_10 = arith.constant 0 : index
    %16 = vector.load %arg4[%c0_9, %c0_10] : memref<32x32xbf16, #tpu.memory_space<vmem>>, vector<32x32xbf16>
    %cst_11 = arith.constant dense<0.000000e+00> : vector<64x32xf32>
    %17 = tpu.matmul %15, %16, %cst_11 {dimension_numbers = #tpu.dot_dimension_numbers<[1], [0], [0], [1], [0, 0, 1, 1], [], []>} : vector<64x32xbf16>, vector<32x32xbf16>, vector<64x32xf32> -> vector<64x32xf32>
    %cst_12 = arith.constant 0.000000e+00 : f32
    %18 = vector.broadcast %cst_12 : f32 to vector<64x32xf32>
    %19 = arith.maximumf %17, %18 : vector<64x32xf32>
    %20 = arith.truncf %19 : vector<64x32xf32> to vector<64x32xbf16>
    %cst_13 = arith.constant dense<0.000000e+00> : vector<64x32xf32>
    %21 = tpu.matmul %0, %20, %cst_13 {dimension_numbers = #tpu.dot_dimension_numbers<[1], [0], [0], [1], [0, 0, 1, 1], [], []>} : vector<64x64xbf16>, vector<64x32xbf16>, vector<64x32xf32> -> vector<64x32xf32>
    %c1 = arith.constant 1 : index
    %22 = memref.load %arg0[%c1] : memref<2xf32, #tpu.memory_space<smem>>
    %cst_14 = arith.constant 1.000000e+00 : f32
    %23 = arith.addf %cst_14, %22 : f32
    %24 = vector.broadcast %23 : f32 to vector<64x32xf32>
    %25 = arith.mulf %24, %19 : vector<64x32xf32>
    %26 = arith.addf %21, %25 : vector<64x32xf32>
    %27 = arith.truncf %26 : vector<64x32xf32> to vector<64x32xbf16>
    %c0_15 = arith.constant 0 : index
    %c0_16 = arith.constant 0 : index
    %28 = vector.load %arg5[%c0_15, %c0_16] : memref<32x32xbf16, #tpu.memory_space<vmem>>, vector<32x32xbf16>
    %cst_17 = arith.constant dense<0.000000e+00> : vector<64x32xf32>
    %29 = tpu.matmul %27, %28, %cst_17 {dimension_numbers = #tpu.dot_dimension_numbers<[1], [0], [0], [1], [0, 0, 1, 1], [], []>} : vector<64x32xbf16>, vector<32x32xbf16>, vector<64x32xf32> -> vector<64x32xf32>
    %cst_18 = arith.constant 0.000000e+00 : f32
    %30 = vector.broadcast %cst_18 : f32 to vector<64x32xf32>
    %31 = arith.maximumf %29, %30 : vector<64x32xf32>
    %32 = arith.truncf %31 : vector<64x32xf32> to vector<64x32xbf16>
    %c0_19 = arith.constant 0 : index
    %c0_20 = arith.constant 0 : index
    %33 = vector.load %arg6[%c0_19, %c0_20] : memref<32x32xbf16, #tpu.memory_space<vmem>>, vector<32x32xbf16>
    %cst_21 = arith.constant dense<0.000000e+00> : vector<64x32xf32>
    %34 = tpu.matmul %32, %33, %cst_21 {dimension_numbers = #tpu.dot_dimension_numbers<[1], [0], [0], [1], [0, 0, 1, 1], [], []>} : vector<64x32xbf16>, vector<32x32xbf16>, vector<64x32xf32> -> vector<64x32xf32>
    %cst_22 = arith.constant 0.000000e+00 : f32
    %35 = vector.broadcast %cst_22 : f32 to vector<64x32xf32>
    %36 = arith.maximumf %34, %35 : vector<64x32xf32>
    %37 = arith.truncf %36 : vector<64x32xf32> to vector<64x32xbf16>
    %c0_23 = arith.constant 0 : index
    %c0_24 = arith.constant 0 : index
    %38 = vector.load %arg7[%c0_23, %c0_24] : memref<32x128xbf16, #tpu.memory_space<vmem>>, vector<32x128xbf16>
    %cst_25 = arith.constant dense<0.000000e+00> : vector<64x128xf32>
    %39 = tpu.matmul %37, %38, %cst_25 {dimension_numbers = #tpu.dot_dimension_numbers<[1], [0], [0], [1], [0, 0, 1, 1], [], []>} : vector<64x32xbf16>, vector<32x128xbf16>, vector<64x128xf32> -> vector<64x128xf32>
    %c0_26 = arith.constant 0 : index
    %c0_27 = arith.constant 0 : index
    %40 = vector.load %arg8[%c0_26, %c0_27] : memref<1x128xf32, #tpu.memory_space<vmem>>, vector<1x128xf32>
    %41 = vector.broadcast %40 : vector<1x128xf32> to vector<64x128xf32>
    %42 = arith.addf %39, %41 : vector<64x128xf32>
    %c0_28 = arith.constant 0 : index
    %c0_29 = arith.constant 0 : index
    %43 = vector.load %arg9[%c0_28, %c0_29] : memref<64x128xf32, #tpu.memory_space<vmem>>, vector<64x128xf32>
    tpu.vector_store %arg9[%c0_28, %c0_29], %42 {strides = array<i32>} : memref<64x128xf32, #tpu.memory_space<vmem>>, vector<64x128xf32>,
    return
  }
}

</mosaic_0001>

<bundles_post_ra>
// kernel: gin_pallas_call.1
= control target key start
LH: loop header
LB: loop body
LE: loop exit
PB: predicated region body
PF: predicated region fallthrough
CT: control target
= control target key end

     0   :  { %14 = vsyncpa [#allocation4], 0  ;;  %s1049_s0 = inlined_call_operand.hbm [shape: f32[2], index: 0, kind: input, shape index: {}]   ;;  %s1050_s1 = inlined_call_operand.vmem [shape: bf16[64,64], index: 1, kind: input, shape index: {}]   ;;  %s1051_s2 = inlined_call_operand.vmem [shape: bf16[64,16], index: 2, kind: input, shape index: {}]   ;;  %s1052_s3 = inlined_call_operand.vmem [shape: bf16[16,32], index: 3, kind: input, shape index: {}]   ;;  %s1053_s4 = inlined_call_operand.hbm [shape: bf16[32,32], index: 4, kind: input, shape index: {}]   ;;  %s1054_s5 = inlined_call_operand.hbm [shape: bf16[32,32], index: 5, kind: input, shape index: {}]   ;;  %s1055_s6 = inlined_call_operand.hbm [shape: bf16[32,32], index: 6, kind: input, shape index: {}]   ;;  %s1056_s7 = inlined_call_operand.hbm [shape: bf16[32,128], index: 7, kind: input, shape index: {}]   ;;  %s1057_s8 = inlined_call_operand.vmem [shape: f32[1,128], index: 8, kind: input, shape index: {}]   ;;  %s1058_s9 = inlined_call_operand.vmem [shape: f32[64,128], index: 9, kind: output, shape index: {}]  }
   0x1   :  { %15 = vsyncpa [#allocation3], 0 }
   0x2   :  { %16 = vsyncpa [#allocation7], 0 }
   0x3   :  { %17 = vsyncpa [#allocation10], 0  ;;  %s50_s11 = sshll.u32 %s1054_s5, 4  ;;  %s867_s12 = smov [#allocation6]   ;;  %s51_s11 = int_to_ptr.hbm [resolvable:$true] %s50_s11 }
   0x4   :  { %s52_s13 = sshll.u32 %s867_s12, 4  ;;  %s23_s16 = sshll.u32 %s1049_s0, 4  ;;  %s53_s13 = int_to_ptr.vmem [resolvable:$true] %s52_s13  ;;  %s24_s16 = int_to_ptr.hbm [resolvable:$true] %s23_s16 }
   0x5   :  { %s868_s17 = smov 64   ;;  %s869_s18 = smov 4  }
   0x6   :  { %58 = dma.hbm_to_vmem [thread:$0]  %s51_s11, 256, %s53_s13, [#allocation7], %s868_s17, %s868_s17, %s869_s18  }
   0x7   :  { %s870_s19 = smov [#allocation2]   ;;  %s37_s22 = sshll.u32 %s1053_s4, 4  ;;  %s38_s22 = int_to_ptr.hbm [resolvable:$true] %s37_s22 }
   0x8   :  { %26 = dma.hbm_to_smem %s24_s16, 16, %s870_s19, [#allocation4]  }
   0x9   :  { %s871_s5 = smov [#allocation5]   ;;  %s63_s26 = sshll.u32 %s1055_s6, 4  ;;  %s64_s26 = int_to_ptr.hbm [resolvable:$true] %s63_s26 }
   0xa   :  { %s39_s23 = sshll.u32 %s871_s5, 4  ;;  %s872_s0 = smov [#allocation8]   ;;  %s40_s23 = int_to_ptr.vmem [resolvable:$true] %s39_s23 }
   0xb   :  { %45 = dma.hbm_to_vmem [thread:$0]  %s38_s22, 256, %s40_s23, [#allocation3], %s868_s17, %s868_s17, %s869_s18  }
   0xc   :  { %s65_s27 = sshll.u32 %s872_s0, 4  ;;  %s76_s30 = sshll.u32 %s1056_s7, 4  ;;  %s66_s27 = int_to_ptr.vmem [resolvable:$true] %s65_s27  ;;  %s77_s30 = int_to_ptr.hbm [resolvable:$true] %s76_s30 }
   0xd   :  { %71 = dma.hbm_to_vmem [thread:$0]  %s64_s26, 256, %s66_s27, [#allocation7], %s868_s17, %s868_s17, %s869_s18  }
   0xe   :  { %s873_s4 = smov [#allocation9]  }
   0xf   :  { %s78_s10 = sshll.u32 %s873_s4, 4  ;;  %s79_s10 = int_to_ptr.vmem [resolvable:$true] %s78_s10 }
  0x10   :  { %84 = dma.hbm_to_vmem [thread:$0]  %s77_s30, 256, %s79_s10, [#allocation10], %s868_s17, %s868_s17, %s869_s18  }
  0x11   :  { %859 = dma.done.wait [#allocation4], 16  }
  0x12   :  { %860 = vsyncadd [#allocation4], 4294967280 }
  0x13   :  { %861 = dma.done.wait [#allocation3], 256  }
  0x14   :  { %862 = vsyncadd [#allocation3], 4294967040 }
  0x15   :  { %863 = dma.done.wait [#allocation7], 512  }
  0x16   :  { %864 = vsyncadd [#allocation7], 4294966784 }
  0x17   :  { %865 = dma.done.wait [#allocation10], 256  }
  0x18   :  { %866 = vsyncadd [#allocation10], 4294967040 }
  0x19   :  { %107 = sfence }
  0x1a   :  { %v729_v0 = vld [vmem:[%s1051_s2 + $0x18] sm:$0xff]  ;;  %v728_v1 = vld [vmem:[%s1051_s2 + $0x10] sm:$0xff]  ;;  %v727_v2 = vld [vmem:[%s1051_s2 + $0x8] sm:$0xff]  ;;  %vm188_vm0 = vcmask 523264   ;;  %s133_s26 = sld [smem:[#allocation2]]  ;;  %vm242_vm1 = vcmask 130048  }
  0x1b   :  { %205 = vmatpush.bf16.msra.mxu0 %v729_v0  ;;  %739 = vmatpush.bf16.msra.mxu3 %v729_v0  ;;  %v726_v3 = vld [vmem:[%s1051_s2] sm:$0xff]  ;;  %v959_v5 = vld [vmem:[%s1050_s1 + $0x8] sm:$0xff]  ;;  %v968_v6 = vld [vmem:[%s1050_s1 + $0x10] sm:$0xff]  ;;  %vm312_vm2 = vcmask 261120  }
  0x1c   :  { %v954_v4 = vld [vmem:[%s1050_s1] sm:$0xff]  ;;  %v975_v7 = vld [vmem:[%s1050_s1 + $0x18] sm:$0xff]  ;;  %v119_v21 = vld [vmem:[%s1051_s2 + $0x8] sm:$0xff]  }
  0x1d   :  { %v730_v8 = vld [vmem:[%s1052_s3] sm:$0xff]  ;;  %v127_v23 = vunpack.c.l.bf16 %v119_v21  ;;  %v128_v24 = vunpack.c.h.bf16 %v119_v21  ;;  %v121_v31 = vld [vmem:[%s1051_s2 + $0x10] sm:$0xff]   ;;  %v123_v41 = vld [vmem:[%s1051_s2 + $0x18] sm:$0xff]  }
  0x1e   :  { %262 = vmatpush.bf16.msra.mxu1 %v730_v8  ;;  %v117_v9 = vld [vmem:[%s1051_s2] sm:$0xff]   ;;  %v129_v32 = vunpack.c.l.bf16 %v121_v31  ;;  %v130_v33 = vunpack.c.h.bf16 %v121_v31  ;;  %v131_v42 = vunpack.c.l.bf16 %v123_v41  ;;  %v132_v43 = vunpack.c.h.bf16 %v123_v41  ;;  %v732_v50 = vld [vmem:[#allocation5 + $0x8] sm:$0xff]  ;;  %s681_s2 = sld [smem:[#allocation2 + $0x1]] }
  0x1f   :  { %206 = vmatpush.bf16.msra.mxu0 %v728_v1  ;;  %740 = vmatpush.bf16.msra.mxu3 %v728_v1  ;;  %v125_v11 = vunpack.c.l.bf16 %v117_v9  ;;  %v126_v12 = vunpack.c.h.bf16 %v117_v9  ;;  %v731_v51 = vld [vmem:[#allocation5] sm:$0xff] }
  0x20   :  { %s134_s28 = sadd.f32 1.0, %s133_s26  ;;  %331 = vmatpush.bf16.msra.mxu2 %v732_v50 }
  0x22   :  { %v135_v13 = vstv %s134_s28 }
  0x23   :  { %207 = vmatpush.bf16.msra.mxu0 %v727_v2  ;;  %741 = vmatpush.bf16.msra.mxu3 %v727_v2  ;;  %v136_v14 = vmul.f32 %v135_v13, %v125_v11  ;;  %v137_v15 = vmul.f32 %v135_v13, %v126_v12  ;;  %v138_v25 = vmul.f32 %v135_v13, %v127_v23 }
  0x24   :  { %v139_v26 = vmul.f32 %v135_v13, %v128_v24  ;;  %v140_v35 = vmul.f32 %v135_v13, %v129_v32  ;;  %v141_v36 = vmul.f32 %v135_v13, %v130_v33  ;;  %v142_v44 = vmul.f32 %v135_v13, %v131_v42  ;;  %332 = vmatpush.bf16.msra.mxu2 %v731_v51  ;;  %v734_v32 = vld [vmem:[#allocation6 + $0x8] sm:$0xff]  ;;  %v733_v33 = vld [vmem:[#allocation6] sm:$0xff]  ;;  %s367_s6 = sadd.f32 1.0, %s681_s2 }
  0x25   :  { %v143_v45 = vmul.f32 %v135_v13, %v132_v43  ;;  %444 = vmatpush.bf16.msrb.mxu1 %v734_v32 }
  0x27   :  { %208 = vmatpush.bf16.msra.mxu0 %v726_v3  ;;  %742 = vmatpush.bf16.msra.mxu3 %v726_v3 }
  0x29   :  { %445 = vmatpush.bf16.msrb.mxu1 %v733_v33 }
  0x2a   :  { %657 = vmatmul.msk.bf16.vlgmr.msra.gmra.mxu0 %vm188_vm0, %v954_v4  ;;  %658 = vmatmul.msk.bf16.vlgmr.msra.gmra.mxu3 %vm188_vm0, %v959_v5 }
  0x3a   :  { %659 = vmatmul.msk.bf16.gmra.mxu3 %vm188_vm0, %v968_v6 }
  0x4a   :  { %660 = vmatmul.msk.bf16.gmra.mxu3 %vm188_vm0, %v975_v7 }
  0xa7   :  { %v210_v10 = vpop.f32.mrf.mxu0 }
  0xa8   :  { %v211_v18 = vadd.f32 %v210_v10, %v136_v14 }
  0xad   :  { %v215_v16 = vpop.f32.mrf.mxu3 }
  0xae   :  { %v216_v28 = vadd.f32 %v215_v16, %v138_v25 }
  0xaf   :  { %v212_v17 = vpop.f32.mrf.mxu0 }
  0xb0   :  { %v213_v19 = vadd.f32 %v212_v17, %v137_v15 }
  0xb2   :  { %v230_v20 = vpack.c.bf16 %v213_v19, %v211_v18 }
  0xb4   :  { %665 = vmatmul.msk.bf16.vlgmr.msra.gmra.mxu1 %vm242_vm1, %v230_v20 }
  0xb5   :  { %v217_v22 = vpop.f32.mrf.mxu3 }
  0xb6   :  { %v218_v29 = vadd.f32 %v217_v22, %v139_v26 }
  0xb8   :  { %v231_v30 = vpack.c.bf16 %v218_v29, %v216_v28 }
  0xbd   :  { %v220_v27 = vpop.f32.mrf.mxu3 }
  0xbe   :  { %v221_v37 = vadd.f32 %v220_v27, %v140_v35  ;;  %v368_v35 = vstv %s367_s6 }
  0xc4   :  { %666 = vmatmul.msk.bf16.gmra.mxu1 %vm242_vm1, %v231_v30 }
  0xc5   :  { %v222_v34 = vpop.f32.mrf.mxu3 }
  0xc6   :  { %v223_v38 = vadd.f32 %v222_v34, %v141_v36 }
  0xc8   :  { %v232_v40 = vpack.c.bf16 %v223_v38, %v221_v37 }
  0xcd   :  { %v225_v39 = vpop.f32.mrf.mxu3 }
  0xce   :  { %v226_v47 = vadd.f32 %v225_v39, %v142_v44 }
  0xd4   :  { %667 = vmatmul.msk.bf16.gmra.mxu1 %vm242_vm1, %v232_v40 }
  0xd5   :  { %v227_v46 = vpop.f32.mrf.mxu3 }
  0xd6   :  { %v228_v48 = vadd.f32 %v227_v46, %v143_v45  ;;  %v736_v45 = vld [vmem:[#allocation8 + $0x8] sm:$0xff] }
  0xd7   :  { %513 = vmatpush.bf16.msrb.mxu2 %v736_v45 }
  0xd8   :  { %v233_v49 = vpack.c.bf16 %v228_v48, %v226_v47 }
  0xe4   :  { %668 = vmatmul.msk.bf16.gmra.mxu1 %vm242_vm1, %v233_v49 }
 0x131   :  { %v264_v52 = vpop.f32.mrf.mxu1 }
 0x132   :  { %v284_v54 = vmax.f32 %v264_v52, 0.0 }
 0x139   :  { %v266_v53 = vpop.f32.mrf.mxu1 }
 0x13a   :  { %v285_v55 = vmax.f32 %v266_v53, 0.0 }
 0x13c   :  { %v292_v56 = vpack.c.bf16 %v285_v55, %v284_v54 }
 0x13e   :  { %677 = vmatmul.msk.bf16.vlgmr.msra.gmra.mxu2 %vm312_vm2, %v292_v56 }
 0x141   :  { %v269_v57 = vpop.f32.mrf.mxu1 }
 0x142   :  { %v286_v59 = vmax.f32 %v269_v57, 0.0 }
 0x149   :  { %v271_v58 = vpop.f32.mrf.mxu1 }
 0x14a   :  { %v287_v60 = vmax.f32 %v271_v58, 0.0 }
 0x14c   :  { %v293_v61 = vpack.c.bf16 %v287_v60, %v286_v59  ;;  %v735_v60 = vld [vmem:[#allocation8] sm:$0xff] }
 0x14d   :  { %514 = vmatpush.bf16.msrb.mxu2 %v735_v60 }
 0x14e   :  { %678 = vmatmul.msk.bf16.gmra.mxu2 %vm312_vm2, %v293_v61 }
 0x151   :  { %v274_v62 = vpop.f32.mrf.mxu1 }
 0x152   :  { %v288_v0 = vmax.f32 %v274_v62, 0.0 }
 0x159   :  { %v276_v63 = vpop.f32.mrf.mxu1 }
 0x15a   :  { %v289_v1 = vmax.f32 %v276_v63, 0.0 }
 0x15c   :  { %v294_v2 = vpack.c.bf16 %v289_v1, %v288_v0 }
 0x15e   :  { %679 = vmatmul.msk.bf16.gmra.mxu2 %vm312_vm2, %v294_v2 }
 0x161   :  { %v279_v3 = vpop.f32.mrf.mxu1 }
 0x162   :  { %v290_v9 = vmax.f32 %v279_v3, 0.0 }
 0x169   :  { %v281_v8 = vpop.f32.mrf.mxu1 }
 0x16a   :  { %v291_v10 = vmax.f32 %v281_v8, 0.0 }
 0x16c   :  { %v295_v11 = vpack.c.bf16 %v291_v10, %v290_v9 }
 0x16e   :  { %680 = vmatmul.msk.bf16.gmra.mxu2 %vm312_vm2, %v295_v11 }
 0x1c1   :  { %v334_v12 = vpop.f32.mrf.mxu2 }
 0x1c2   :  { %v354_v30 = vmax.f32 %v334_v12, 0.0 }
 0x1c4   :  { %v369_v36 = vmul.f32 %v368_v35, %v354_v30 }
 0x1c9   :  { %v336_v13 = vpop.f32.mrf.mxu2 }
 0x1ca   :  { %v355_v28 = vmax.f32 %v336_v13, 0.0 }
 0x1cc   :  { %v362_v31 = vpack.c.bf16 %v355_v28, %v354_v30  ;;  %v370_v37 = vmul.f32 %v368_v35, %v355_v28 }
 0x1d1   :  { %v339_v14 = vpop.f32.mrf.mxu2 }
 0x1d2   :  { %v356_v27 = vmax.f32 %v339_v14, 0.0 }
 0x1d4   :  { %v371_v41 = vmul.f32 %v368_v35, %v356_v27 }
 0x1d9   :  { %v341_v15 = vpop.f32.mrf.mxu2 }
 0x1da   :  { %v357_v25 = vmax.f32 %v341_v15, 0.0 }
 0x1dc   :  { %v363_v29 = vpack.c.bf16 %v357_v25, %v356_v27 }
 0x1e1   :  { %v344_v16 = vpop.f32.mrf.mxu2 }
 0x1e2   :  { %v358_v24 = vmax.f32 %v344_v16, 0.0 }
 0x1e4   :  { %v373_v47 = vmul.f32 %v368_v35, %v358_v24 }
 0x1e9   :  { %v346_v17 = vpop.f32.mrf.mxu2 }
 0x1ea   :  { %v359_v22 = vmax.f32 %v346_v17, 0.0 }
 0x1ec   :  { %v364_v26 = vpack.c.bf16 %v359_v22, %v358_v24  ;;  %v374_v48 = vmul.f32 %v368_v35, %v359_v22  ;;  %v737_v22 = vld [vmem:[#allocation9] sm:$0xff] }
 0x1f1   :  { %v349_v18 = vpop.f32.mrf.mxu2 }
 0x1f2   :  { %v360_v20 = vmax.f32 %v349_v18, 0.0 }
 0x1f4   :  { %v375_v54 = vmul.f32 %v368_v35, %v360_v20 }
 0x1f9   :  { %v351_v19 = vpop.f32.mrf.mxu2 }
 0x1fa   :  { %v361_v21 = vmax.f32 %v351_v19, 0.0 }
 0x1fc   :  { %v365_v23 = vpack.c.bf16 %v361_v21, %v360_v20  ;;  %v376_v55 = vmul.f32 %v368_v35, %v361_v21  ;;  %v738_v21 = vld [vmem:[#allocation9 + $0x8] sm:$0xff] }
 0x1fd   :  { %586 = vmatpush.bf16.msrb.mxu0 %v738_v21 }
 0x1fe   :  { %381 = vmatpush.bf16.msrb.mxu3 %v365_v23 }
 0x201   :  { %587 = vmatpush.bf16.msrb.mxu0 %v737_v22 }
 0x202   :  { %382 = vmatpush.bf16.msrb.mxu3 %v364_v26 }
 0x206   :  { %383 = vmatpush.bf16.msrb.mxu3 %v363_v29 }
 0x20a   :  { %384 = vmatpush.bf16.msrb.mxu3 %v362_v31 }
 0x20d   :  { %682 = vmatmul.msk.bf16.vlgmr.msrb.gmra.mxu3 %vm188_vm0, %v954_v4 }
 0x21d   :  { %683 = vmatmul.msk.bf16.gmra.mxu3 %vm188_vm0, %v959_v5 }
 0x22d   :  { %684 = vmatmul.msk.bf16.gmra.mxu3 %vm188_vm0, %v968_v6  ;;  %v372_v6 = vmul.f32 %v368_v35, %v357_v25 }
 0x23d   :  { %685 = vmatmul.msk.bf16.gmra.mxu3 %vm188_vm0, %v975_v7 }
 0x290   :  { %v386_v34 = vpop.f32.mrf.mxu3 }
 0x291   :  { %v387_v38 = vadd.f32 %v386_v34, %v369_v36 }
 0x298   :  { %v388_v4 = vpop.f32.mrf.mxu3 }
 0x299   :  { %v389_v39 = vadd.f32 %v388_v4, %v370_v37 }
 0x29b   :  { %v406_v5 = vpack.c.bf16 %v389_v39, %v387_v38 }
 0x29d   :  { %694 = vmatmul.msk.bf16.vlgmr.msrb.gmra.mxu1 %vm312_vm2, %v406_v5 }
 0x2a0   :  { %v391_v40 = vpop.f32.mrf.mxu3 }
 0x2a1   :  { %v392_v43 = vadd.f32 %v391_v40, %v371_v41  ;;  %v750_v41 = vld [vmem:[%s1057_s8] ss:$0 sm:$0xff] }
 0x2a8   :  { %v393_v42 = vpop.f32.mrf.mxu3 }
 0x2a9   :  { %v394_v7 = vadd.f32 %v393_v42, %v372_v6 }
 0x2ab   :  { %v407_v44 = vpack.c.bf16 %v394_v7, %v392_v43 }
 0x2ad   :  { %695 = vmatmul.msk.bf16.gmra.mxu1 %vm312_vm2, %v407_v44 }
 0x2b0   :  { %v396_v46 = vpop.f32.mrf.mxu3 }
 0x2b1   :  { %v397_v50 = vadd.f32 %v396_v46, %v373_v47 }
 0x2b8   :  { %v398_v49 = vpop.f32.mrf.mxu3 }
 0x2b9   :  { %v399_v51 = vadd.f32 %v398_v49, %v374_v48 }
 0x2bb   :  { %v408_v52 = vpack.c.bf16 %v399_v51, %v397_v50 }
 0x2bd   :  { %696 = vmatmul.msk.bf16.gmra.mxu1 %vm312_vm2, %v408_v52 }
 0x2c0   :  { %v401_v53 = vpop.f32.mrf.mxu3 }
 0x2c1   :  { %v402_v57 = vadd.f32 %v401_v53, %v375_v54 }
 0x2c8   :  { %v403_v56 = vpop.f32.mrf.mxu3 }
 0x2c9   :  { %v404_v58 = vadd.f32 %v403_v56, %v376_v55 }
 0x2cb   :  { %v409_v59 = vpack.c.bf16 %v404_v58, %v402_v57 }
 0x2cd   :  { %697 = vmatmul.msk.bf16.gmra.mxu1 %vm312_vm2, %v409_v59 }
 0x31a   :  { %v447_v61 = vpop.f32.mrf.mxu1 }
 0x31b   :  { %v467_v63 = vmax.f32 %v447_v61, 0.0 }
 0x322   :  { %v449_v62 = vpop.f32.mrf.mxu1 }
 0x323   :  { %v468_v0 = vmax.f32 %v449_v62, 0.0 }
 0x325   :  { %v475_v1 = vpack.c.bf16 %v468_v0, %v467_v63 }
 0x327   :  { %706 = vmatmul.msk.bf16.vlgmr.msrb.gmra.mxu2 %vm312_vm2, %v475_v1 }
 0x32a   :  { %v452_v2 = vpop.f32.mrf.mxu1 }
 0x32b   :  { %v469_v8 = vmax.f32 %v452_v2, 0.0 }
 0x332   :  { %v454_v3 = vpop.f32.mrf.mxu1 }
 0x333   :  { %v470_v9 = vmax.f32 %v454_v3, 0.0 }
 0x335   :  { %v476_v10 = vpack.c.bf16 %v470_v9, %v469_v8 }
 0x337   :  { %707 = vmatmul.msk.bf16.gmra.mxu2 %vm312_vm2, %v476_v10 }
 0x33a   :  { %v457_v11 = vpop.f32.mrf.mxu1 }
 0x33b   :  { %v471_v13 = vmax.f32 %v457_v11, 0.0 }
 0x342   :  { %v459_v12 = vpop.f32.mrf.mxu1 }
 0x343   :  { %v472_v14 = vmax.f32 %v459_v12, 0.0 }
 0x345   :  { %v477_v15 = vpack.c.bf16 %v472_v14, %v471_v13 }
 0x347   :  { %708 = vmatmul.msk.bf16.gmra.mxu2 %vm312_vm2, %v477_v15 }
 0x34a   :  { %v462_v16 = vpop.f32.mrf.mxu1 }
 0x34b   :  { %v473_v18 = vmax.f32 %v462_v16, 0.0 }
 0x352   :  { %v464_v17 = vpop.f32.mrf.mxu1 }
 0x353   :  { %v474_v19 = vmax.f32 %v464_v17, 0.0 }
 0x355   :  { %v478_v20 = vpack.c.bf16 %v474_v19, %v473_v18 }
 0x357   :  { %709 = vmatmul.msk.bf16.gmra.mxu2 %vm312_vm2, %v478_v20 }
 0x3aa   :  { %v516_v23 = vpop.f32.mrf.mxu2 }
 0x3ab   :  { %v536_v25 = vmax.f32 %v516_v23, 0.0 }
 0x3b2   :  { %v518_v24 = vpop.f32.mrf.mxu2 }
 0x3b3   :  { %v537_v26 = vmax.f32 %v518_v24, 0.0 }
 0x3b5   :  { %v544_v27 = vpack.c.bf16 %v537_v26, %v536_v25 }
 0x3b7   :  { %718 = vmatmul.msk.bf16.vlgmr.msrb.gmra.mxu0 %vm312_vm2, %v544_v27 }
 0x3ba   :  { %v521_v28 = vpop.f32.mrf.mxu2 }
 0x3bb   :  { %v538_v30 = vmax.f32 %v521_v28, 0.0 }
 0x3c2   :  { %v523_v29 = vpop.f32.mrf.mxu2 }
 0x3c3   :  { %v539_v31 = vmax.f32 %v523_v29, 0.0 }
 0x3c5   :  { %v545_v32 = vpack.c.bf16 %v539_v31, %v538_v30 }
 0x3c7   :  { %719 = vmatmul.msk.bf16.gmra.mxu0 %vm312_vm2, %v545_v32 }
 0x3ca   :  { %v526_v33 = vpop.f32.mrf.mxu2 }
 0x3cb   :  { %v540_v35 = vmax.f32 %v526_v33, 0.0 }
 0x3d2   :  { %v528_v34 = vpop.f32.mrf.mxu2 }
 0x3d3   :  { %v541_v36 = vmax.f32 %v528_v34, 0.0 }
 0x3d5   :  { %v546_v37 = vpack.c.bf16 %v541_v36, %v540_v35 }
 0x3d7   :  { %720 = vmatmul.msk.bf16.gmra.mxu0 %vm312_vm2, %v546_v37 }
 0x3da   :  { %v531_v4 = vpop.f32.mrf.mxu2 }
 0x3db   :  { %v542_v39 = vmax.f32 %v531_v4, 0.0 }
 0x3e2   :  { %v533_v38 = vpop.f32.mrf.mxu2 }
 0x3e3   :  { %v543_v5 = vmax.f32 %v533_v38, 0.0 }
 0x3e5   :  { %v547_v40 = vpack.c.bf16 %v543_v5, %v542_v39 }
 0x3e7   :  { %721 = vmatmul.msk.bf16.gmra.mxu0 %vm312_vm2, %v547_v40 }
 0x434   :  { %v589_v6 = vpop.f32.mrf.mxu0 }
 0x435   :  { %v590_v42 = vadd.f32 %v750_v41, %v589_v6 }
 0x437   :  { %609 = vst [vmem:[%s1058_s9] sm:$0xff] %v590_v42 }
 0x43c   :  { %v591_v43 = vpop.f32.mrf.mxu0 }
 0x43d   :  { %v592_v7 = vadd.f32 %v750_v41, %v591_v43 }
 0x43f   :  { %610 = vst [vmem:[%s1058_s9 + $0x8] sm:$0xff] %v592_v7 }
 0x444   :  { %v594_v44 = vpop.f32.mrf.mxu0 }
 0x445   :  { %v595_v45 = vadd.f32 %v750_v41, %v594_v44 }
 0x447   :  { %611 = vst [vmem:[%s1058_s9 + $0x10] sm:$0xff] %v595_v45 }
 0x44c   :  { %v596_v46 = vpop.f32.mrf.mxu0 }
 0x44d   :  { %v597_v47 = vadd.f32 %v750_v41, %v596_v46 }
 0x44f   :  { %612 = vst [vmem:[%s1058_s9 + $0x18] sm:$0xff] %v597_v47 }
 0x454   :  { %v599_v48 = vpop.f32.mrf.mxu0 }
 0x455   :  { %v600_v49 = vadd.f32 %v750_v41, %v599_v48 }
 0x457   :  { %613 = vst [vmem:[%s1058_s9 + $0x20] sm:$0xff] %v600_v49 }
 0x45c   :  { %v601_v50 = vpop.f32.mrf.mxu0 }
 0x45d   :  { %v602_v51 = vadd.f32 %v750_v41, %v601_v50 }
 0x45f   :  { %614 = vst [vmem:[%s1058_s9 + $0x28] sm:$0xff] %v602_v51 }
 0x464   :  { %v604_v52 = vpop.f32.mrf.mxu0 }
 0x465   :  { %v605_v53 = vadd.f32 %v750_v41, %v604_v52 }
 0x467   :  { %615 = vst [vmem:[%s1058_s9 + $0x30] sm:$0xff] %v605_v53 }
 0x46c   :  { %v606_v54 = vpop.f32.mrf.mxu0 }
 0x46d   :  { %v607_v55 = vadd.f32 %v750_v41, %v606_v54 }
 0x46f   :  { %616 = vst [vmem:[%s1058_s9 + $0x38] sm:$0xff] %v607_v55 }
 0x470   :  { %621 = vsyncpa [#allocation3], 1 }
 0x471   :  { %622 = vsyncpa [#allocation7], 1 }
 0x472   :  { %623 = vsyncpa [#allocation10], 1 }
 0x473   :  { %624 = vsyncpa [#allocation4], 1 }

</bundles_post_ra>
